<compile_context>
chip_gen: v6e
topology: v6e:2x2x1
jax: 0.10.0
libtpu: 0.0.40
codegen_flags: <defaults>
</compile_context>

<pallas_src>
import jax
import jax.numpy as jnp
from jax.experimental import pallas as pl
from jax.experimental.pallas import tpu as pltpu

HIDDEN = 128                 # hidden width of both MLPs (fixed by the module)
LANE = 128                   # TPU lane width
BATCH_ALIGN = 16             # bf16 vregs pack (16, 128): batch tiles in multiples of 16

VMEM_BUDGET_BYTES = 40 * 1024 * 1024   # block budget; fits v7x 64 MiB physical with headroom
VMEM_LIMIT_BYTES = 56 * 1024 * 1024    # scoped limit passed to Mosaic (> v5e/v6e defaults, < v7x physical)


def _round_up(x, m):
    return (x + m - 1) // m * m


# --------------------------------------------------------------------------
# Kernel
# --------------------------------------------------------------------------
def autoencoder_kernel(x_ref,
                       w1_ref, b1_ref,   # encoder layer 1: (Dp, 128) bf16, (1, 128) f32
                       w2_ref, b2_ref,   # encoder layer 2: (128, Lp) bf16, (1, Lp)  f32
                       w3_ref, b3_ref,   # decoder layer 1: (Lp, 128) bf16, (1, 128) f32
                       w4_ref, b4_ref,   # decoder layer 2: (128, Dp) bf16, (1, Dp)  f32
                       x_recon_ref, z_ref):
    # In-kernel cast: x streams from HBM once at its native dtype.
    x = x_ref[...].astype(jnp.bfloat16)                            # (TB, Dp)

    # ----- Encoder -----
    h1 = jnp.dot(x, w1_ref[...],
                 preferred_element_type=jnp.float32) + b1_ref[...]
    h1 = jnp.maximum(h1, 0.0)                                      # ReLU in f32
    z = jnp.dot(h1.astype(jnp.bfloat16), w2_ref[...],
                preferred_element_type=jnp.float32) + b2_ref[...]

    # ----- Decoder -----
    h2 = jnp.dot(z.astype(jnp.bfloat16), w3_ref[...],
                 preferred_element_type=jnp.float32) + b3_ref[...]
    h2 = jnp.maximum(h2, 0.0)                                      # ReLU in f32
    x_recon = jnp.dot(h2.astype(jnp.bfloat16), w4_ref[...],
                      preferred_element_type=jnp.float32) + b4_ref[...]

    z_ref[...] = z.astype(z_ref.dtype)
    x_recon_ref[...] = x_recon.astype(x_recon_ref.dtype)


# --------------------------------------------------------------------------
# Tiling / VMEM sizing
# --------------------------------------------------------------------------
def _block_vmem_bytes(TB, Dp, Lp, in_bytes, out_bytes):
    x_blk = 2 * TB * Dp * in_bytes                                     # double-buffered input
    out_blk = 2 * TB * (Dp + Lp) * out_bytes                           # double-buffered outputs
    w_blk = 2 * 2 * (Dp * HIDDEN + HIDDEN * Lp + Lp * HIDDEN + HIDDEN * Dp)  # bf16, 2 buffers
    b_blk = 2 * 4 * (2 * HIDDEN + Lp + Dp)                             # f32 biases, 2 buffers
    act = 4 * TB * (2 * HIDDEN + Lp + Dp)                              # f32 intermediates
    return x_blk + out_blk + w_blk + b_blk + act


def _pick_batch_tiling(B, Dp, Lp, block_b, in_bytes, out_bytes):
    """Pick (TB, n_tiles) with TB % 16 == 0, <1 tile of batch-pad waste, >=2 grid
    steps when the batch allows (v7x megacore), and blocks within the VMEM budget."""
    Bp_a = _round_up(max(B, BATCH_ALIGN), BATCH_ALIGN)
    n_tiles = pl.cdiv(Bp_a, block_b)
    if Bp_a >= 2 * BATCH_ALIGN:
        n_tiles = max(n_tiles, 2)          # keep both v7x TensorCores busy
    TB = _round_up(pl.cdiv(Bp_a, n_tiles), BATCH_ALIGN)
    # Shrink TB if blocks would overflow the VMEM budget.
    # TODO(synk): for very large input_dim (Dp >~ 8K) tile the first matmul over K
    # and the last over N with an f32 VMEM accumulator instead of shrinking TB.
    while TB > BATCH_ALIGN and _block_vmem_bytes(TB, Dp, Lp, in_bytes, out_bytes) > VMEM_BUDGET_BYTES:
        TB = _round_up(TB // 2, BATCH_ALIGN)
    n_tiles = pl.cdiv(Bp_a, TB)
    TB = _round_up(pl.cdiv(Bp_a, n_tiles), BATCH_ALIGN)   # rebalance: tail waste < n_tiles*16 rows
    return TB, n_tiles


# --------------------------------------------------------------------------
# Params (pad + cast ONCE, not per forward call)
# --------------------------------------------------------------------------
def prepare_params(params):
    """Pad weights to lane-dense widths and cast to bf16 (biases f32). Call once."""
    D = params["w1"].shape[0]
    L = params["w2"].shape[1]
    Dp = _round_up(D, LANE)
    Lp = _round_up(L, LANE)

    def pad2(a, rows, cols, dtype):
        if a.shape == (rows, cols) and a.dtype == jnp.dtype(dtype):
            return a
        return jnp.zeros((rows, cols), dtype).at[:a.shape[0], :a.shape[1]].set(a.astype(dtype))

    return dict(
        w1=pad2(params["w1"], Dp, HIDDEN, jnp.bfloat16),
        b1=pad2(params["b1"], 1, HIDDEN, jnp.float32),
        w2=pad2(params["w2"], HIDDEN, Lp, jnp.bfloat16),
        b2=pad2(params["b2"], 1, Lp, jnp.float32),
        w3=pad2(params["w3"], Lp, HIDDEN, jnp.bfloat16),
        b3=pad2(params["b3"], 1, HIDDEN, jnp.float32),
        w4=pad2(params["w4"], HIDDEN, Dp, jnp.bfloat16),
        b4=pad2(params["b4"], 1, Dp, jnp.float32),
        input_dim=D, latent_dim=L, Dp=Dp, Lp=Lp,
    )


# --------------------------------------------------------------------------
# Forward wrapper
# --------------------------------------------------------------------------
def autoencoder_forward(x, prep, *, block_b=512, out_dtype=jnp.float32):
    """x: (B, input_dim) float32. prep: output of prepare_params().

    Returns (x_recon, z) of shapes (B, input_dim) / (B, latent_dim) in out_dtype
    (float32 default == PyTorch semantics; bfloat16 halves the dominant write stream).
    """
    B, D = x.shape
    L, Dp, Lp = prep["latent_dim"], prep["Dp"], prep["Lp"]
    assert D == prep["input_dim"], "x feature dim does not match prepared params"

    in_bytes = jnp.dtype(x.dtype).itemsize
    out_bytes = jnp.dtype(out_dtype).itemsize
    TB, n_tiles = _pick_batch_tiling(B, Dp, Lp, block_b, in_bytes, out_bytes)
    Bp = n_tiles * TB

    # Pad x only when actually required (kept in its native dtype; cast is in-kernel).
    if (Bp, Dp) != (B, D):
        xk = jnp.zeros((Bp, Dp), x.dtype).at[:B, :D].set(x)
    else:
        xk = x

    batch_map = lambda i: (i, 0)    # tiles over batch
    const_map = lambda i: (0, 0)    # weights/biases resident across the grid
    # TODO(synk): mark the 8 const specs pipeline_mode=pl.Buffered(1) (single-buffered
    # invariant operands) once verified on the target jax version; reclaims a little VMEM.

    x_recon_p, z_p = pl.pallas_call(
        autoencoder_kernel,
        out_shape=(
            jax.ShapeDtypeStruct((Bp, Dp), out_dtype),   # x_recon (possibly padded)
            jax.ShapeDtypeStruct((Bp, Lp), out_dtype),   # z       (possibly padded)
        ),
        grid_spec=pltpu.PrefetchScalarGridSpec(
            num_scalar_prefetch=0,
            grid=(n_tiles,),
            in_specs=[
                pl.BlockSpec((TB, Dp), batch_map),
                pl.BlockSpec((Dp, HIDDEN), const_map),
                pl.BlockSpec((1, HIDDEN), const_map),
                pl.BlockSpec((HIDDEN, Lp), const_map),
                pl.BlockSpec((1, Lp), const_map),
                pl.BlockSpec((Lp, HIDDEN), const_map),
                pl.BlockSpec((1, HIDDEN), const_map),
                pl.BlockSpec((HIDDEN, Dp), const_map),
                pl.BlockSpec((1, Dp), const_map),
            ],
            out_specs=[
                pl.BlockSpec((TB, Dp), batch_map),
                pl.BlockSpec((TB, Lp), batch_map),
            ],
        ),
        compiler_params=pltpu.CompilerParams(
            dimension_semantics=("parallel",),
            vmem_limit_bytes=VMEM_LIMIT_BYTES,
        ),
    )(xk, prep["w1"], prep["b1"], prep["w2"], prep["b2"],
      prep["w3"], prep["b3"], prep["w4"], prep["b4"])

    # Un-pad only when padding was applied (otherwise return the buffers as-is).
    x_recon = x_recon_p if (Bp, Dp) == (B, D) else x_recon_p[:B, :D]
    z = z_p if (Bp, Lp) == (B, L) else z_p[:B, :L]
    return x_recon, z


# --------------------------------------------------------------------------
# Init + pure-JAX reference
# --------------------------------------------------------------------------
def init_params(key, input_dim, latent_dim, hidden=HIDDEN):
    """Deterministic init matching torch.nn.Linear defaults.
    Weights are stored pre-transposed: (in_features, out_features)."""
    ks = jax.random.split(key, 8)

    def linear(kw, kb, fan_in, fan_out):
        bound = 1.0 / jnp.sqrt(fan_in)
        w = jax.random.uniform(kw, (fan_in, fan_out), jnp.float32, -bound, bound)
        b = jax.random.uniform(kb, (1, fan_out), jnp.float32, -bound, bound)
        return w, b

    w1, b1 = linear(ks[0], ks[1], input_dim, hidden)    # Encoder Linear(input_dim, 128)
    w2, b2 = linear(ks[2], ks[3], hidden, latent_dim)   # Encoder Linear(128, latent_dim)
    w3, b3 = linear(ks[4], ks[5], latent_dim, hidden)   # Decoder Linear(latent_dim, 128)
    w4, b4 = linear(ks[6], ks[7], hidden, input_dim)    # Decoder Linear(128, input_dim)
    return dict(w1=w1, b1=b1, w2=w2, b2=b2, w3=w3, b3=b3, w4=w4, b4=b4)


def reference_forward(x, p):
    """Pure-JAX reference mirroring the kernel's bf16-operand / f32-accum math."""
    bf16, f32 = jnp.bfloat16, jnp.float32
    h1 = jnp.maximum(
        jnp.dot(x.astype(bf16), p["w1"].astype(bf16), preferred_element_type=f32) + p["b1"], 0.0)
    z = jnp.dot(h1.astype(bf16), p["w2"].astype(bf16), preferred_element_type=f32) + p["b2"]
    h2 = jnp.maximum(
        jnp.dot(z.astype(bf16), p["w3"].astype(bf16), preferred_element_type=f32) + p["b3"], 0.0)
    x_recon = jnp.dot(h2.astype(bf16), p["w4"].astype(bf16), preferred_element_type=f32) + p["b4"]
    return x_recon, z


# --------------------------------------------------------------------------
# Self-test
# --------------------------------------------------------------------------
if __name__ == "__main__":
    key = jax.random.PRNGKey(0)
    k1, k2, k3, k4 = jax.random.split(key, 4)

    # Case 1: tiny dims (feature padding needed, single batch tile).
    B1, D1, L1 = 8, 32, 8
    x1 = jax.random.normal(k1, (B1, D1), jnp.float32)
    params1 = init_params(k2, D1, L1)
    prep1 = prepare_params(params1)
    xr1, z1 = autoencoder_forward(x1, prep1)
    jax.block_until_ready((xr1, z1))
    xr1_ref, z1_ref = reference_forward(x1, params1)
    assert xr1.shape == (B1, D1) and z1.shape == (B1, L1)
    assert jnp.allclose(z1, z1_ref, atol=1e-2, rtol=1e-2)
    assert jnp.allclose(xr1, xr1_ref, atol=1e-2, rtol=1e-2)

    # Case 2: lane-exact feature dims (no feature padding), multi-tile batch grid
    #         with batch padding; also exercise bf16 outputs.
    B2, D2, L2 = 40, 256, 128
    x2 = jax.random.normal(k3, (B2, D2), jnp.float32)
    params2 = init_params(k4, D2, L2)
    prep2 = prepare_params(params2)
    xr2, z2 = autoencoder_forward(x2, prep2)
    xr2b, z2b = autoencoder_forward(x2, prep2, out_dtype=jnp.bfloat16)
    jax.block_until_ready((xr2, z2, xr2b, z2b))
    xr2_ref, z2_ref = reference_forward(x2, params2)
    assert xr2.shape == (B2, D2) and z2.shape == (B2, L2)
    assert jnp.allclose(z2, z2_ref, atol=1e-2, rtol=1e-2)
    assert jnp.allclose(xr2, xr2_ref, atol=1e-2, rtol=1e-2)
    assert jnp.allclose(z2b.astype(jnp.float32), z2_ref, atol=5e-2, rtol=5e-2)
    assert jnp.allclose(xr2b.astype(jnp.float32), xr2_ref, atol=5e-2, rtol=5e-2)

    print("KERNEL_OK")
</pallas_src>

<mosaic_0001>
module attributes {stable_mosaic.version = 11 : i64} {
  func.func @autoencoder_kernel(%arg0: i32, %arg1: memref<16x128xf32, #tpu.memory_space<vmem>>, %arg2: memref<128x128xbf16, #tpu.memory_space<vmem>>, %arg3: memref<1x128xf32, #tpu.memory_space<vmem>>, %arg4: memref<128x128xbf16, #tpu.memory_space<vmem>>, %arg5: memref<1x128xf32, #tpu.memory_space<vmem>>, %arg6: memref<128x128xbf16, #tpu.memory_space<vmem>>, %arg7: memref<1x128xf32, #tpu.memory_space<vmem>>, %arg8: memref<128x128xbf16, #tpu.memory_space<vmem>>, %arg9: memref<1x128xf32, #tpu.memory_space<vmem>>, %arg10: memref<16x128xf32, #tpu.memory_space<vmem>>, %arg11: memref<16x128xf32, #tpu.memory_space<vmem>>) attributes {dimension_semantics = [#tpu.dimension_semantics<parallel>], iteration_bounds = array<i64: 1>, scalar_prefetch = 0 : i64, scratch_operands = 0 : i64, tpu.core_type = #tpu.core_type<tc>, window_params = [{transform_indices = @transform_0, window_bounds = array<i64: 16, 128>}, {pipeline_mode = #tpu.pipeline_mode<synchronous>, transform_indices = @transform_1, window_bounds = array<i64: 128, 128>}, {pipeline_mode = #tpu.pipeline_mode<synchronous>, transform_indices = @transform_2, window_bounds = array<i64: 1, 128>}, {pipeline_mode = #tpu.pipeline_mode<synchronous>, transform_indices = @transform_3, window_bounds = array<i64: 128, 128>}, {pipeline_mode = #tpu.pipeline_mode<synchronous>, transform_indices = @transform_4, window_bounds = array<i64: 1, 128>}, {pipeline_mode = #tpu.pipeline_mode<synchronous>, transform_indices = @transform_5, window_bounds = array<i64: 128, 128>}, {pipeline_mode = #tpu.pipeline_mode<synchronous>, transform_indices = @transform_6, window_bounds = array<i64: 1, 128>}, {pipeline_mode = #tpu.pipeline_mode<synchronous>, transform_indices = @transform_7, window_bounds = array<i64: 128, 128>}, {pipeline_mode = #tpu.pipeline_mode<synchronous>, transform_indices = @transform_8, window_bounds = array<i64: 1, 128>}, {transform_indices = @transform_9, window_bounds = array<i64: 16, 128>}, {transform_indices = @transform_10, window_bounds = array<i64: 16, 128>}]} {
    %c0 = arith.constant 0 : index
    %c0_0 = arith.constant 0 : index
    %0 = vector.load %arg1[%c0, %c0_0] : memref<16x128xf32, #tpu.memory_space<vmem>>, vector<16x128xf32>
    %1 = arith.truncf %0 : vector<16x128xf32> to vector<16x128xbf16>
    %c0_1 = arith.constant 0 : index
    %c0_2 = arith.constant 0 : index
    %2 = vector.load %arg2[%c0_1, %c0_2] : memref<128x128xbf16, #tpu.memory_space<vmem>>, vector<128x128xbf16>
    %cst = arith.constant dense<0.000000e+00> : vector<16x128xf32>
    %3 = tpu.matmul %1, %2, %cst {dimension_numbers = #tpu.dot_dimension_numbers<[1], [0], [0], [1], [0, 0, 1, 1], [], []>} : vector<16x128xbf16>, vector<128x128xbf16>, vector<16x128xf32> -> vector<16x128xf32>
    %c0_3 = arith.constant 0 : index
    %c0_4 = arith.constant 0 : index
    %4 = vector.load %arg3[%c0_3, %c0_4] : memref<1x128xf32, #tpu.memory_space<vmem>>, vector<1x128xf32>
    %5 = vector.broadcast %4 : vector<1x128xf32> to vector<16x128xf32>
    %6 = arith.addf %3, %5 : vector<16x128xf32>
    %cst_5 = arith.constant 0.000000e+00 : f32
    %7 = vector.broadcast %cst_5 : f32 to vector<16x128xf32>
    %8 = arith.maximumf %6, %7 : vector<16x128xf32>
    %9 = arith.truncf %8 : vector<16x128xf32> to vector<16x128xbf16>
    %c0_6 = arith.constant 0 : index
    %c0_7 = arith.constant 0 : index
    %10 = vector.load %arg4[%c0_6, %c0_7] : memref<128x128xbf16, #tpu.memory_space<vmem>>, vector<128x128xbf16>
    %cst_8 = arith.constant dense<0.000000e+00> : vector<16x128xf32>
    %11 = tpu.matmul %9, %10, %cst_8 {dimension_numbers = #tpu.dot_dimension_numbers<[1], [0], [0], [1], [0, 0, 1, 1], [], []>} : vector<16x128xbf16>, vector<128x128xbf16>, vector<16x128xf32> -> vector<16x128xf32>
    %c0_9 = arith.constant 0 : index
    %c0_10 = arith.constant 0 : index
    %12 = vector.load %arg5[%c0_9, %c0_10] : memref<1x128xf32, #tpu.memory_space<vmem>>, vector<1x128xf32>
    %13 = vector.broadcast %12 : vector<1x128xf32> to vector<16x128xf32>
    %14 = arith.addf %11, %13 : vector<16x128xf32>
    %15 = arith.truncf %14 : vector<16x128xf32> to vector<16x128xbf16>
    %c0_11 = arith.constant 0 : index
    %c0_12 = arith.constant 0 : index
    %16 = vector.load %arg6[%c0_11, %c0_12] : memref<128x128xbf16, #tpu.memory_space<vmem>>, vector<128x128xbf16>
    %cst_13 = arith.constant dense<0.000000e+00> : vector<16x128xf32>
    %17 = tpu.matmul %15, %16, %cst_13 {dimension_numbers = #tpu.dot_dimension_numbers<[1], [0], [0], [1], [0, 0, 1, 1], [], []>} : vector<16x128xbf16>, vector<128x128xbf16>, vector<16x128xf32> -> vector<16x128xf32>
    %c0_14 = arith.constant 0 : index
    %c0_15 = arith.constant 0 : index
    %18 = vector.load %arg7[%c0_14, %c0_15] : memref<1x128xf32, #tpu.memory_space<vmem>>, vector<1x128xf32>
    %19 = vector.broadcast %18 : vector<1x128xf32> to vector<16x128xf32>
    %20 = arith.addf %17, %19 : vector<16x128xf32>
    %cst_16 = arith.constant 0.000000e+00 : f32
    %21 = vector.broadcast %cst_16 : f32 to vector<16x128xf32>
    %22 = arith.maximumf %20, %21 : vector<16x128xf32>
    %23 = arith.truncf %22 : vector<16x128xf32> to vector<16x128xbf16>
    %c0_17 = arith.constant 0 : index
    %c0_18 = arith.constant 0 : index
    %24 = vector.load %arg8[%c0_17, %c0_18] : memref<128x128xbf16, #tpu.memory_space<vmem>>, vector<128x128xbf16>
    %cst_19 = arith.constant dense<0.000000e+00> : vector<16x128xf32>
    %25 = tpu.matmul %23, %24, %cst_19 {dimension_numbers = #tpu.dot_dimension_numbers<[1], [0], [0], [1], [0, 0, 1, 1], [], []>} : vector<16x128xbf16>, vector<128x128xbf16>, vector<16x128xf32> -> vector<16x128xf32>
    %c0_20 = arith.constant 0 : index
    %c0_21 = arith.constant 0 : index
    %26 = vector.load %arg9[%c0_20, %c0_21] : memref<1x128xf32, #tpu.memory_space<vmem>>, vector<1x128xf32>
    %27 = vector.broadcast %26 : vector<1x128xf32> to vector<16x128xf32>
    %28 = arith.addf %25, %27 : vector<16x128xf32>
    %c0_22 = arith.constant 0 : index
    %c0_23 = arith.constant 0 : index
    %29 = vector.load %arg11[%c0_22, %c0_23] : memref<16x128xf32, #tpu.memory_space<vmem>>, vector<16x128xf32>
    tpu.vector_store %arg11[%c0_22, %c0_23], %14 {strides = array<i32>} : memref<16x128xf32, #tpu.memory_space<vmem>>, vector<16x128xf32>,
    %c0_24 = arith.constant 0 : index
    %c0_25 = arith.constant 0 : index
    %30 = vector.load %arg10[%c0_24, %c0_25] : memref<16x128xf32, #tpu.memory_space<vmem>>, vector<16x128xf32>
    tpu.vector_store %arg10[%c0_24, %c0_25], %28 {strides = array<i32>} : memref<16x128xf32, #tpu.memory_space<vmem>>, vector<16x128xf32>,
    return
  }
  func.func @transform_0(%arg0: i32) -> (i32, i32) {
    %c0_i32 = arith.constant 0 : i32
    %c0_i32_0 = arith.constant 0 : i32
    return %arg0, %c0_i32 : i32, i32
  }
  func.func @transform_1(%arg0: i32) -> (i32, i32) {
    %c0_i32 = arith.constant 0 : i32
    %c0_i32_0 = arith.constant 0 : i32
    %c0_i32_1 = arith.constant 0 : i32
    return %c0_i32, %c0_i32_0 : i32, i32
  }
  func.func @transform_2(%arg0: i32) -> (i32, i32) {
    %c0_i32 = arith.constant 0 : i32
    %c0_i32_0 = arith.constant 0 : i32
    %c0_i32_1 = arith.constant 0 : i32
    return %c0_i32, %c0_i32_0 : i32, i32
  }
  func.func @transform_3(%arg0: i32) -> (i32, i32) {
    %c0_i32 = arith.constant 0 : i32
    %c0_i32_0 = arith.constant 0 : i32
    %c0_i32_1 = arith.constant 0 : i32
    return %c0_i32, %c0_i32_0 : i32, i32
  }
  func.func @transform_4(%arg0: i32) -> (i32, i32) {
    %c0_i32 = arith.constant 0 : i32
    %c0_i32_0 = arith.constant 0 : i32
    %c0_i32_1 = arith.constant 0 : i32
    return %c0_i32, %c0_i32_0 : i32, i32
  }
  func.func @transform_5(%arg0: i32) -> (i32, i32) {
    %c0_i32 = arith.constant 0 : i32
    %c0_i32_0 = arith.constant 0 : i32
    %c0_i32_1 = arith.constant 0 : i32
    return %c0_i32, %c0_i32_0 : i32, i32
  }
  func.func @transform_6(%arg0: i32) -> (i32, i32) {
    %c0_i32 = arith.constant 0 : i32
    %c0_i32_0 = arith.constant 0 : i32
    %c0_i32_1 = arith.constant 0 : i32
    return %c0_i32, %c0_i32_0 : i32, i32
  }
  func.func @transform_7(%arg0: i32) -> (i32, i32) {
    %c0_i32 = arith.constant 0 : i32
    %c0_i32_0 = arith.constant 0 : i32
    %c0_i32_1 = arith.constant 0 : i32
    return %c0_i32, %c0_i32_0 : i32, i32
  }
  func.func @transform_8(%arg0: i32) -> (i32, i32) {
    %c0_i32 = arith.constant 0 : i32
    %c0_i32_0 = arith.constant 0 : i32
    %c0_i32_1 = arith.constant 0 : i32
    return %c0_i32, %c0_i32_0 : i32, i32
  }
  func.func @transform_9(%arg0: i32) -> (i32, i32) {
    %c0_i32 = arith.constant 0 : i32
    %c0_i32_0 = arith.constant 0 : i32
    return %arg0, %c0_i32 : i32, i32
  }
  func.func @transform_10(%arg0: i32) -> (i32, i32) {
    %c0_i32 = arith.constant 0 : i32
    %c0_i32_0 = arith.constant 0 : i32
    return %arg0, %c0_i32 : i32, i32
  }
}

</mosaic_0001>

<bundles_post_ra>
// kernel: tpu_custom_call.1
= control target key start
LH: loop header
LB: loop body
LE: loop exit
PB: predicated region body
PF: predicated region fallthrough
CT: control target
= control target key end

     0   :  { %16 = vsyncpa [#allocation3], 0  ;;  %s1111_s0 = inlined_call_operand.hbm [shape: f32[16,128], index: 0, kind: input, shape index: {}]   ;;  %s1112_s1 = inlined_call_operand.hbm [shape: bf16[128,128], index: 1, kind: input, shape index: {}]   ;;  %s1113_s2 = inlined_call_operand.vmem [shape: f32[1,128], index: 2, kind: input, shape index: {}]   ;;  %s1114_s3 = inlined_call_operand.hbm [shape: bf16[128,128], index: 3, kind: input, shape index: {}]   ;;  %s1115_s4 = inlined_call_operand.vmem [shape: f32[1,128], index: 4, kind: input, shape index: {}]   ;;  %s1116_s5 = inlined_call_operand.hbm [shape: bf16[128,128], index: 5, kind: input, shape index: {}]   ;;  %s1117_s6 = inlined_call_operand.vmem [shape: f32[1,128], index: 6, kind: input, shape index: {}]   ;;  %s1118_s7 = inlined_call_operand.hbm [shape: bf16[128,128], index: 7, kind: input, shape index: {}]   ;;  %s1119_s8 = inlined_call_operand.vmem [shape: f32[1,128], index: 8, kind: input, shape index: {}]   ;;  %s1120_s9 = inlined_call_operand.hbm [shape: f32[16,128], index: 9, kind: output, shape index: {0}]   ;;  %s1121_s10 = inlined_call_operand.hbm [shape: f32[16,128], index: 10, kind: output, shape index: {1}]  }
   0x1   :  { %17 = vsyncpa [#allocation6], 0 }
   0x2   :  { %18 = vsyncpa [#allocation9], 0 }
   0x3   :  { %19 = vsyncpa [#allocation4], 0 }
   0x4   :  { %20 = vsyncpa [#allocation13], 0  ;;  %s949_s13 = smov [#allocation5]  }
   0x5   :  { %s38_s14 = sshll.u32 %s949_s13, 4  ;;  %s39_s14 = int_to_ptr.vmem [resolvable:$true] %s38_s14 }
   0x6   :  { %s807_s15 = scalar_lea.vmem %s39_s14, 1024  ;;  %p812_p1 = scmp.lt.s32.totalorder %s39_s14, %s39_s14 }
   0x7   :  { %p808_p0 = scmp.ne.s32.totalorder %s39_s14, %s807_s15  ;;  %p813_p2 = scmp.lt.s32.totalorder %s807_s15, %s807_s15 }
   0x9   :  { %p814_p3 = por %p813_p2, %p812_p1 }
   0xb   :  { %p815_p4 = pnand %p814_p3, %p808_p0 }
   0xd   :  { %818 = shalt.err (!%p815_p4)
}
   0xe   :  { %s950_s16 = smov 64   ;;  %s951_s17 = smov 4  }
   0xf   :  { %44 = dma.hbm_to_vmem [thread:$0]  %s1112_s1, 1024, %s39_s14, [#allocation6], %s950_s16, %s950_s16, %s951_s17  }
  0x10   :  { %s952_s20 = smov [#allocation8]   ;;  %s953_s22 = smov [#allocation2]  }
  0x11   :  { %s66_s21 = sshll.u32 %s952_s20, 4  ;;  %s26_s23 = sshll.u32 %s953_s22, 4  ;;  %s67_s21 = int_to_ptr.vmem [resolvable:$true] %s66_s21  ;;  %s27_s23 = int_to_ptr.vmem [resolvable:$true] %s26_s23 }
  0x12   :  { %s827_s24 = scalar_lea.vmem %s67_s21, 1024  ;;  %p832_p6 = scmp.lt.s32.totalorder %s67_s21, %s67_s21 }
  0x13   :  { %p828_p5 = scmp.ne.s32.totalorder %s67_s21, %s827_s24  ;;  %p833_p7 = scmp.lt.s32.totalorder %s827_s24, %s827_s24 }
  0x15   :  { %p834_p8 = por %p833_p7, %p832_p6 }
  0x17   :  { %p835_p9 = pnand %p834_p8, %p828_p5 }
  0x19   :  { %838 = shalt.err (!%p835_p9)
}
  0x1a   :  { %72 = dma.hbm_to_vmem [thread:$0]  %s1116_s5, 1024, %s67_s21, [#allocation9], %s950_s16, %s950_s16, %s951_s17  }
  0x1b   :  { %s847_s1 = scalar_lea.vmem %s27_s23, 256  ;;  %p852_p11 = scmp.lt.s32.totalorder %s27_s23, %s27_s23 }
  0x1c   :  { %p848_p10 = scmp.ne.s32.totalorder %s27_s23, %s847_s1  ;;  %p853_p12 = scmp.lt.s32.totalorder %s847_s1, %s847_s1 }
  0x1e   :  { %p854_p13 = por %p853_p12, %p852_p11 }
  0x20   :  { %p855_p0 = pnand %p854_p13, %p848_p10 }
  0x22   :  { %858 = shalt.err (!%p855_p0)
}
  0x23   :  { %s954_s27 = smov 128   ;;  %s955_s28 = smov 8  }
  0x24   :  { %32 = dma.hbm_to_vmem [thread:$0]  %s1111_s0, 256, %s27_s23, [#allocation3], %s954_s27, %s954_s27, %s955_s28  }
  0x25   :  { %s956_s11 = smov [#allocation7]   ;;  %s957_s5 = smov [#allocation10]  }
  0x26   :  { %s52_s12 = sshll.u32 %s956_s11, 4  ;;  %s80_s13 = sshll.u32 %s957_s5, 4  ;;  %s53_s12 = int_to_ptr.vmem [resolvable:$true] %s52_s12  ;;  %s81_s13 = int_to_ptr.vmem [resolvable:$true] %s80_s13 }
  0x27   :  { %s867_s14 = scalar_lea.vmem %s53_s12, 1024  ;;  %p872_p2 = scmp.lt.s32.totalorder %s53_s12, %s53_s12 }
  0x28   :  { %p868_p1 = scmp.ne.s32.totalorder %s53_s12, %s867_s14  ;;  %p873_p3 = scmp.lt.s32.totalorder %s867_s14, %s867_s14 }
  0x2a   :  { %p874_p4 = por %p873_p3, %p872_p2 }
  0x2c   :  { %p875_p5 = pnand %p874_p4, %p868_p1 }
  0x2e   :  { %878 = shalt.err (!%p875_p5)
}
  0x2f   :  { %58 = dma.hbm_to_vmem [thread:$0]  %s1114_s3, 1024, %s53_s12, [#allocation6], %s950_s16, %s950_s16, %s951_s17  }
  0x30   :  { %s887_s0 = scalar_lea.vmem %s81_s13, 1024  ;;  %p892_p7 = scmp.lt.s32.totalorder %s81_s13, %s81_s13 }
  0x31   :  { %p888_p6 = scmp.ne.s32.totalorder %s81_s13, %s887_s0  ;;  %p893_p8 = scmp.lt.s32.totalorder %s887_s0, %s887_s0 }
  0x33   :  { %p894_p9 = por %p893_p8, %p892_p7 }
  0x35   :  { %p895_p10 = pnand %p894_p9, %p888_p6 }
  0x37   :  { %898 = shalt.err (!%p895_p10)
}
  0x38   :  { %86 = dma.hbm_to_vmem [thread:$0]  %s1118_s7, 1024, %s81_s13, [#allocation9], %s950_s16, %s950_s16, %s951_s17  }
  0x39   :  { %939 = dma.done.wait [#allocation3], 256  }
  0x3a   :  { %940 = vsyncadd [#allocation3], 4294967040 }
  0x3b   :  { %941 = dma.done.wait [#allocation6], 2048  }
  0x3c   :  { %942 = vsyncadd [#allocation6], 4294965248 }
  0x3d   :  { %943 = dma.done.wait [#allocation9], 2048  }
  0x3e   :  { %944 = vsyncadd [#allocation9], 4294965248  ;;  %v958_v0 = vmov 0.0   ;;  %vm959_vm0 = vmmov 0   ;;  %v767_v1 = vld [vmem:[#allocation5 + $0x38] sm:$0xff]   ;;  %v768_v2 = vld [vmem:[#allocation5 + $0x30] sm:$0xff]  }
  0x3f   :  { %674 = vmatprep.subr.bf16.mxu0 %v958_v0  ;;  %690 = vmatprep.mubr.msk.bf16.mxu0 %vm959_vm0, %v958_v0  ;;  %v769_v3 = vld [vmem:[#allocation5 + $0x28] sm:$0xff]   ;;  %v775_v4 = vld [vmem:[#allocation7 + $0x38] sm:$0xff]   ;;  %v770_v5 = vld [vmem:[#allocation5 + $0x20] sm:$0xff]   ;;  %s960_s21 = smov [#allocation12]  }
  0x40   :  { %694 = vmatprep.subr.bf16.mxu1 %v958_v0  ;;  %710 = vmatprep.mubr.msk.bf16.mxu1 %vm959_vm0, %v958_v0  ;;  %v776_v6 = vld [vmem:[#allocation7 + $0x30] sm:$0xff]   ;;  %v771_v7 = vld [vmem:[#allocation5 + $0x18] sm:$0xff]   ;;  %v777_v8 = vld [vmem:[#allocation7 + $0x28] sm:$0xff]   ;;  %s584_s22 = sshll.u32 %s960_s21, 4  ;;  %s585_s22 = int_to_ptr.vmem [resolvable:$true] %s584_s22 }
  0x41   :  { %675 = vmatpush3.bf16.msra.mxu0 %v767_v1  ;;  %695 = vmatpush3.bf16.msra.mxu1 %v775_v4  ;;  %v772_v9 = vld [vmem:[#allocation5 + $0x10] sm:$0xff]   ;;  %v778_v10 = vld [vmem:[#allocation7 + $0x20] sm:$0xff]   ;;  %v773_v11 = vld [vmem:[#allocation5 + $0x8] sm:$0xff]   ;;  %s899_s23 = scalar_lea.vmem %s585_s22, 256  ;;  %p904_p12 = scmp.lt.s32.totalorder %s585_s22, %s585_s22 }
  0x42   :  { %676 = vmatprep.subr.bf16.mxu0 %v958_v0  ;;  %696 = vmatprep.subr.bf16.mxu1 %v958_v0  ;;  %v779_v12 = vld [vmem:[#allocation7 + $0x18] sm:$0xff]   ;;  %v774_v13 = vld [vmem:[#allocation5] sm:$0xff]   ;;  %v105_v14 = vld [vmem:[#allocation2] sm:$0xff]  ;;  %p900_p11 = scmp.ne.s32.totalorder %s585_s22, %s899_s23  ;;  %p905_p13 = scmp.lt.s32.totalorder %s899_s23, %s899_s23 }
  0x43   :  { %v106_v15 = vld [vmem:[#allocation2 + $0x8] sm:$0xff]  ;;  %v780_v17 = vld [vmem:[#allocation7 + $0x10] sm:$0xff]   ;;  %v781_v18 = vld [vmem:[#allocation7 + $0x8] sm:$0xff]  }
  0x44   :  { %v107_v16 = vpack.c.bf16 %v106_v15, %v105_v14  ;;  %v782_v19 = vld [vmem:[#allocation7] sm:$0xff]   ;;  %v783_v20 = vld [vmem:[#allocation8 + $0x38] sm:$0xff]   ;;  %v784_v21 = vld [vmem:[#allocation8 + $0x30] sm:$0xff]   ;;  %p906_p0 = por %p905_p13, %p904_p12 }
  0x45   :  { %677 = vmatpush3.bf16.msra.mxu0 %v768_v2  ;;  %697 = vmatpush3.bf16.msra.mxu1 %v776_v6  ;;  %v785_v22 = vld [vmem:[#allocation8 + $0x28] sm:$0xff]   ;;  %v786_v23 = vld [vmem:[#allocation8 + $0x20] sm:$0xff]   ;;  %v787_v24 = vld [vmem:[#allocation8 + $0x18] sm:$0xff]  }
  0x46   :  { %678 = vmatprep.subr.bf16.mxu0 %v958_v0  ;;  %698 = vmatprep.subr.bf16.mxu1 %v958_v0  ;;  %v788_v25 = vld [vmem:[#allocation8 + $0x10] sm:$0xff]   ;;  %v789_v36 = vld [vmem:[#allocation8 + $0x8] sm:$0xff]   ;;  %v790_v37 = vld [vmem:[#allocation8] sm:$0xff]   ;;  %p907_p1 = pnand %p906_p0, %p900_p11 }
  0x47   :  { %v602_v26 = vld [vmem:[%s1113_s2] ss:$0 sm:$0xff]  ;;  %v791_v38 = vld [vmem:[#allocation10 + $0x38] sm:$0xff]   ;;  %v793_v40 = vld [vmem:[#allocation10 + $0x28] sm:$0xff]  }
  0x48   :  { %v792_v39 = vld [vmem:[#allocation10 + $0x30] sm:$0xff]   ;;  %v794_v41 = vld [vmem:[#allocation10 + $0x20] sm:$0xff]   ;;  %v795_v42 = vld [vmem:[#allocation10 + $0x18] sm:$0xff]  }
  0x49   :  { %679 = vmatpush3.bf16.msra.mxu0 %v769_v3  ;;  %699 = vmatpush3.bf16.msra.mxu1 %v777_v8  ;;  %v611_v43 = vld [vmem:[%s1115_s4] ss:$0 sm:$0xff]  ;;  %v797_v52 = vld [vmem:[#allocation10 + $0x8] sm:$0xff]   ;;  %v798_v53 = vld [vmem:[#allocation10] sm:$0xff]  }
  0x4a   :  { %680 = vmatprep.subr.bf16.mxu0 %v958_v0  ;;  %700 = vmatprep.subr.bf16.mxu1 %v958_v0  ;;  %v796_v51 = vld [vmem:[#allocation10 + $0x10] sm:$0xff]  }
  0x4b   :  { %v620_v54 = vld [vmem:[%s1117_s6] ss:$0 sm:$0xff] }
  0x4d   :  { %681 = vmatpush3.bf16.msra.mxu0 %v770_v5  ;;  %701 = vmatpush3.bf16.msra.mxu1 %v778_v10 }
  0x4e   :  { %682 = vmatprep.subr.bf16.mxu0 %v958_v0  ;;  %702 = vmatprep.subr.bf16.mxu1 %v958_v0 }
  0x51   :  { %683 = vmatpush3.bf16.msra.mxu0 %v771_v7  ;;  %703 = vmatpush3.bf16.msra.mxu1 %v779_v12 }
  0x52   :  { %684 = vmatprep.subr.bf16.mxu0 %v958_v0  ;;  %704 = vmatprep.subr.bf16.mxu1 %v958_v0 }
  0x55   :  { %685 = vmatpush3.bf16.msra.mxu0 %v772_v9  ;;  %705 = vmatpush3.bf16.msra.mxu1 %v780_v17 }
  0x56   :  { %686 = vmatprep.subr.bf16.mxu0 %v958_v0  ;;  %706 = vmatprep.subr.bf16.mxu1 %v958_v0 }
  0x59   :  { %687 = vmatpush3.bf16.msra.mxu0 %v773_v11  ;;  %707 = vmatpush3.bf16.msra.mxu1 %v781_v18 }
  0x5a   :  { %688 = vmatprep.subr.bf16.mxu0 %v958_v0  ;;  %708 = vmatprep.subr.bf16.mxu1 %v958_v0 }
  0x5d   :  { %689 = vmatpush3.bf16.msra.mxu0 %v774_v13  ;;  %709 = vmatpush3.bf16.msra.mxu1 %v782_v19 }
  0x5e   :  { %714 = vmatprep.subr.bf16.mxu0 %v958_v0  ;;  %734 = vmatprep.subr.bf16.mxu1 %v958_v0 }
  0x60   :  { %691 = vmatmul.mubr.bf16.vlgmr.msra.gmra.mxu0 %v107_v16 }
  0x61   :  { %730 = vmatprep.mubr.msk.bf16.mxu0 %vm959_vm0, %v958_v0  ;;  %715 = vmatpush3.bf16.msra.mxu0 %v783_v20 }
  0x62   :  { %716 = vmatprep.subr.bf16.mxu0 %v958_v0 }
  0x65   :  { %717 = vmatpush3.bf16.msra.mxu0 %v784_v21 }
  0x66   :  { %718 = vmatprep.subr.bf16.mxu0 %v958_v0 }
  0x69   :  { %719 = vmatpush3.bf16.msra.mxu0 %v785_v22 }
  0x6a   :  { %720 = vmatprep.subr.bf16.mxu0 %v958_v0 }
  0x6d   :  { %721 = vmatpush3.bf16.msra.mxu0 %v786_v23 }
  0x6e   :  { %722 = vmatprep.subr.bf16.mxu0 %v958_v0 }
  0x71   :  { %723 = vmatpush3.bf16.msra.mxu0 %v787_v24 }
  0x72   :  { %724 = vmatprep.subr.bf16.mxu0 %v958_v0 }
  0x75   :  { %725 = vmatpush3.bf16.msra.mxu0 %v788_v25 }
  0x76   :  { %726 = vmatprep.subr.bf16.mxu0 %v958_v0 }
  0x79   :  { %727 = vmatpush3.bf16.msra.mxu0 %v789_v36 }
  0x7a   :  { %728 = vmatprep.subr.bf16.mxu0 %v958_v0 }
  0x7d   :  { %729 = vmatpush3.bf16.msra.mxu0 %v790_v37 }
 0x120   :  { %v213_v27 = vpop.f32.mrf.mxu0 }
 0x121   :  { %v214_v29 = vadd.f32 %v602_v26, %v213_v27 }
 0x122   :  { %v692_v28 = vpop.f32.mrf.mxu0 }
 0x123   :  { %v220_v33 = vmax.f32 %v214_v29, 0.0 }
 0x124   :  { %v216_v30 = vpop.f32.mrf.mxu0 }
 0x125   :  { %v217_v31 = vadd.f32 %v602_v26, %v216_v30 }
 0x126   :  { %v693_v32 = vpop.f32.mrf.mxu0 }
 0x127   :  { %v221_v34 = vmax.f32 %v217_v31, 0.0 }
 0x129   :  { %v222_v35 = vpack.c.bf16 %v221_v34, %v220_v33 }
 0x12b   :  { %711 = vmatmul.mubr.bf16.vlgmr.msra.gmra.mxu1 %v222_v35 }
 0x12c   :  { %750 = vmatprep.mubr.msk.bf16.mxu1 %vm959_vm0, %v958_v0  ;;  %735 = vmatpush3.bf16.msra.mxu1 %v791_v38 }
 0x12d   :  { %736 = vmatprep.subr.bf16.mxu1 %v958_v0 }
 0x130   :  { %737 = vmatpush3.bf16.msra.mxu1 %v792_v39 }
 0x131   :  { %738 = vmatprep.subr.bf16.mxu1 %v958_v0 }
 0x134   :  { %739 = vmatpush3.bf16.msra.mxu1 %v793_v40 }
 0x135   :  { %740 = vmatprep.subr.bf16.mxu1 %v958_v0 }
 0x138   :  { %741 = vmatpush3.bf16.msra.mxu1 %v794_v41 }
 0x139   :  { %742 = vmatprep.subr.bf16.mxu1 %v958_v0 }
 0x13c   :  { %743 = vmatpush3.bf16.msra.mxu1 %v795_v42 }
 0x13d   :  { %744 = vmatprep.subr.bf16.mxu1 %v958_v0 }
 0x140   :  { %745 = vmatpush3.bf16.msra.mxu1 %v796_v51 }
 0x141   :  { %746 = vmatprep.subr.bf16.mxu1 %v958_v0 }
 0x144   :  { %747 = vmatpush3.bf16.msra.mxu1 %v797_v52 }
 0x145   :  { %748 = vmatprep.subr.bf16.mxu1 %v958_v0 }
 0x148   :  { %749 = vmatpush3.bf16.msra.mxu1 %v798_v53 }
 0x1eb   :  { %v328_v44 = vpop.f32.mrf.mxu1 }
 0x1ec   :  { %v329_v45 = vadd.f32 %v611_v43, %v328_v44 }
 0x1ed   :  { %v712_v46 = vpop.f32.mrf.mxu1 }
 0x1ee   :  { %563 = vst [vmem:[#allocation12] sm:$0xff] %v329_v45 }
 0x1ef   :  { %v331_v47 = vpop.f32.mrf.mxu1 }
 0x1f0   :  { %v332_v48 = vadd.f32 %v611_v43, %v331_v47 }
 0x1f1   :  { %v713_v49 = vpop.f32.mrf.mxu1 }
 0x1f2   :  { %v335_v50 = vpack.c.bf16 %v332_v48, %v329_v45  ;;  %564 = vst [vmem:[#allocation12 + $0x8] sm:$0xff] %v332_v48 }
 0x1f4   :  { %731 = vmatmul.mubr.bf16.vlgmr.msra.gmra.mxu0 %v335_v50 }
 0x2b4   :  { %v441_v55 = vpop.f32.mrf.mxu0 }
 0x2b5   :  { %v442_v57 = vadd.f32 %v620_v54, %v441_v55 }
 0x2b6   :  { %v732_v56 = vpop.f32.mrf.mxu0 }
 0x2b7   :  { %v448_v61 = vmax.f32 %v442_v57, 0.0 }
 0x2b8   :  { %v444_v58 = vpop.f32.mrf.mxu0 }
 0x2b9   :  { %v445_v59 = vadd.f32 %v620_v54, %v444_v58 }
 0x2ba   :  { %v733_v60 = vpop.f32.mrf.mxu0 }
 0x2bb   :  { %v449_v62 = vmax.f32 %v445_v59, 0.0 }
 0x2bd   :  { %v450_v63 = vpack.c.bf16 %v449_v62, %v448_v61 }
 0x2bf   :  { %751 = vmatmul.mubr.bf16.vlgmr.msra.gmra.mxu1 %v450_v63 }
 0x2c0   :  { %910 = shalt.err (!%p907_p1)
}
 0x2c1   :  { %590 = dma.vmem_to_hbm [thread:$0]  %s585_s22, 256, %s1121_s10, [#allocation13], %s954_s27, %s954_s27, %s955_s28  }
 0x2c2   :  { %v629_v0 = vld [vmem:[%s1119_s8] ss:$0 sm:$0xff]  ;;  %s961_s1 = smov [#allocation11]  }
 0x2c3   :  { %s572_s29 = sshll.u32 %s961_s1, 4  ;;  %s573_s29 = int_to_ptr.vmem [resolvable:$true] %s572_s29 }
 0x2c4   :  { %s919_s30 = scalar_lea.vmem %s573_s29, 256  ;;  %p924_p3 = scmp.lt.s32.totalorder %s573_s29, %s573_s29 }
 0x2c5   :  { %p920_p2 = scmp.ne.s32.totalorder %s573_s29, %s919_s30  ;;  %p925_p4 = scmp.lt.s32.totalorder %s919_s30, %s919_s30 }
 0x2c7   :  { %p926_p5 = por %p925_p4, %p924_p3 }
 0x2c9   :  { %p927_p6 = pnand %p926_p5, %p920_p2 }
 0x37f   :  { %v556_v1 = vpop.f32.mrf.mxu1 }
 0x380   :  { %v557_v2 = vadd.f32 %v629_v0, %v556_v1 }
 0x381   :  { %v752_v3 = vpop.f32.mrf.mxu1 }
 0x382   :  { %565 = vst [vmem:[#allocation11] sm:$0xff] %v557_v2 }
 0x383   :  { %v559_v4 = vpop.f32.mrf.mxu1 }
 0x384   :  { %v560_v5 = vadd.f32 %v629_v0, %v559_v4 }
 0x385   :  { %v753_v6 = vpop.f32.mrf.mxu1 }
 0x386   :  { %566 = vst [vmem:[#allocation11 + $0x8] sm:$0xff] %v560_v5 }
 0x387   :  { %930 = shalt.err (!%p927_p6)
}
 0x388   :  { %578 = dma.vmem_to_hbm [thread:$0]  %s573_s29, 256, %s1120_s9, [#allocation4], %s954_s27, %s954_s27, %s955_s28  }
 0x389   :  { %945 = dma.done.wait [#allocation4], 256  }
 0x38a   :  { %946 = vsyncadd [#allocation4], 4294967040 }
 0x38b   :  { %947 = dma.done.wait [#allocation13], 256  }
 0x38c   :  { %948 = vsyncadd [#allocation13], 4294967040 }
 0x38d   :  { %597 = vsyncpa [#allocation3], 1 }
 0x38e   :  { %598 = vsyncpa [#allocation6], 1 }
 0x38f   :  { %599 = vsyncpa [#allocation9], 1 }
 0x390   :  { %600 = vsyncpa [#allocation4], 1 }
 0x391   :  { %601 = vsyncpa [#allocation13], 1 }

</bundles_post_ra>
